<compile_context>
chip_gen: v6e
topology: v6e:2x2x1
jax: 0.10.0
libtpu: 0.0.40
codegen_flags: <defaults>
</compile_context>

<pallas_src>
import jax
import jax.numpy as jnp
from jax.experimental import pallas as pl
from jax.experimental.pallas import tpu as pltpu


def make_decoder_kernel(n_layers):
    """One decode step per grid iteration: fused embedding -> n_layers LSTM -> fc_out.

    hidden/cell are carried across grid steps in VMEM scratch and only written back on
    the final step; all weights stay VMEM-resident for the whole T-step decode.
    """

    def kernel(tok_ref, h_in_ref, c_in_ref, embf_ref, wx_ref, wh_ref, b_ref,
               wfc_ref, bfc_ref, pred_ref, h_out_ref, c_out_ref, h_sc, c_sc):
        t = pl.program_id(0)

        # Load the initial recurrent state into the VMEM carry on the first step only.
        @pl.when(t == 0)
        def _():
            h_sc[...] = h_in_ref[...].astype(jnp.float32)
            c_sc[...] = c_in_ref[...].astype(jnp.float32)

        B = tok_ref.shape[1]
        V = embf_ref.shape[0]
        H = h_sc.shape[-1]
        w_dtype = embf_ref.dtype          # bf16 weight storage, f32 accumulation

        # Embedding lookup fused with the layer-0 input projection:
        # one_hot([B,V]) @ (emb @ w_ih0^T) == emb[tok] @ w_ih0^T  -> one MXU push.
        tok = tok_ref[0]                                            # [B, 1] int32
        lane = jax.lax.broadcasted_iota(jnp.int32, (B, V), 1)
        one_hot = (lane == tok).astype(w_dtype)                     # [B, V]

        x = None
        for l in range(n_layers):
            h_prev = h_sc[l]                                        # [B, H] f32
            c_prev = c_sc[l]
            if l == 0:
                gx = jnp.dot(one_hot, embf_ref[...],
                             preferred_element_type=jnp.float32)    # [B, 4H]
            else:
                gx = jnp.dot(x.astype(w_dtype), wx_ref[l - 1],
                             preferred_element_type=jnp.float32)
            gh = jnp.dot(h_prev.astype(w_dtype), wh_ref[l],
                         preferred_element_type=jnp.float32)

            # Single lane-dense [B, 4H] pre-activation (PyTorch gate order i,f,g,o;
            # b_ih + b_hh folded at init); gates extracted with static lane slices.
            gates = gx + gh + b_ref[l]                              # [B, 4H] f32
            i_g = jax.nn.sigmoid(gates[:, 0 * H:1 * H])
            f_g = jax.nn.sigmoid(gates[:, 1 * H:2 * H])
            g_g = jnp.tanh(gates[:, 2 * H:3 * H])
            o_g = jax.nn.sigmoid(gates[:, 3 * H:4 * H])

            c_new = f_g * c_prev + i_g * g_g
            h_new = o_g * jnp.tanh(c_new)
            h_sc[l] = h_new
            c_sc[l] = c_new
            x = h_new
            # TODO(synk): inter-layer dropout is training-only (eval-mode identity here).

        # fc_out (no softmax: defined in __init__ but never applied in forward()).
        pred = (jnp.dot(x.astype(w_dtype), wfc_ref[...],
                        preferred_element_type=jnp.float32) + bfc_ref[...])
        pred_ref[0] = pred.astype(pred_ref.dtype)

        # Write the recurrent state back to HBM only once, on the final step.
        @pl.when(t == pl.num_programs(0) - 1)
        def _():
            h_out_ref[...] = h_sc[...].astype(h_out_ref.dtype)
            c_out_ref[...] = c_sc[...].astype(c_out_ref.dtype)

    return kernel


def init_decoder_params(key, output_dim, emb_dim, hid_dim, n_layers,
                        param_dtype=jnp.bfloat16):
    """Synthetic params mirroring nn.Embedding / nn.LSTM / nn.Linear, packed for the
    kernel (lane-dense [*, 4H] gate matrices, stacked per-layer, bf16 MXU operands)."""
    ks = jax.random.split(key, 1 + 4 * n_layers + 2)
    it = iter(ks)
    scale = 1.0 / jnp.sqrt(hid_dim)

    embedding = jax.random.normal(next(it), (output_dim, emb_dim), jnp.float32) * 0.1

    layers_raw = []
    for l in range(n_layers):
        in_dim = emb_dim if l == 0 else hid_dim
        w_ih = jax.random.uniform(next(it), (4 * hid_dim, in_dim),
                                  jnp.float32, -scale, scale)
        w_hh = jax.random.uniform(next(it), (4 * hid_dim, hid_dim),
                                  jnp.float32, -scale, scale)
        b_ih = jax.random.uniform(next(it), (4 * hid_dim,), jnp.float32, -scale, scale)
        b_hh = jax.random.uniform(next(it), (4 * hid_dim,), jnp.float32, -scale, scale)
        layers_raw.append((w_ih, w_hh, b_ih + b_hh))

    w_fc = jax.random.uniform(next(it), (output_dim, hid_dim), jnp.float32, -scale, scale)
    b_fc = jax.random.uniform(next(it), (output_dim,), jnp.float32, -scale, scale)

    # ---- packed kernel operands -------------------------------------------------
    # Embedding folded into the layer-0 input projection: [V, 4H].
    emb_fold = (embedding @ layers_raw[0][0].T).astype(param_dtype)
    # Input-projection weights for layers >= 1, stacked lane-dense: [L-1, H, 4H].
    if n_layers > 1:
        wx_all = jnp.stack([layers_raw[l][0].T for l in range(1, n_layers)]
                           ).astype(param_dtype)
    else:
        wx_all = jnp.zeros((1, hid_dim, 4 * hid_dim), param_dtype)   # dummy, never read
    # Recurrent weights, stacked: [L, H, 4H].
    wh_all = jnp.stack([layers_raw[l][1].T for l in range(n_layers)]).astype(param_dtype)
    # Folded biases (b_ih + b_hh), kept in f32: [L, 1, 4H].
    b_all = jnp.stack([layers_raw[l][2].reshape(1, 4 * hid_dim)
                       for l in range(n_layers)]).astype(jnp.float32)

    return {
        "emb_fold": emb_fold,
        "wx_all": wx_all,
        "wh_all": wh_all,
        "b_all": b_all,
        "w_fc_t": w_fc.T.astype(param_dtype),                    # [H, V]
        "b_fc": b_fc.reshape(1, output_dim).astype(jnp.float32),  # [1, V]
        # Raw PyTorch-layout copies kept only for the pure-JAX reference check.
        "_embedding": embedding,
        "_layers": [{"w_ih": w, "w_hh": wh, "b": b} for (w, wh, b) in layers_raw],
        "_w_fc": w_fc,
        "_b_fc": b_fc,
    }


def decoder_forward_seq(params, tokens, hidden, cell):
    """Teacher-forced multi-step decode in ONE pallas_call.

    tokens: [T, B] int32; hidden/cell: [L, B, H].
    Returns preds [T, B, V], hidden [L, B, H], cell [L, B, H] (after the last step).
    """
    T, B = tokens.shape
    L, _, H = hidden.shape
    V = params["emb_fold"].shape[0]
    G = 4 * H
    Lx = params["wx_all"].shape[0]

    tok = tokens.reshape(T, B, 1).astype(jnp.int32)
    args = (tok, hidden, cell, params["emb_fold"], params["wx_all"],
            params["wh_all"], params["b_all"], params["w_fc_t"], params["b_fc"])

    grid_spec = pltpu.PrefetchScalarGridSpec(
        num_scalar_prefetch=0,
        grid=(T,),
        in_specs=[
            pl.BlockSpec((1, B, 1), lambda t: (t, 0, 0)),      # tokens: one step each
            pl.BlockSpec((L, B, H), lambda t: (0, 0, 0)),      # hidden_in
            pl.BlockSpec((L, B, H), lambda t: (0, 0, 0)),      # cell_in
            pl.BlockSpec((V, G), lambda t: (0, 0)),            # emb_fold  (resident)
            pl.BlockSpec((Lx, H, G), lambda t: (0, 0, 0)),     # wx_all    (resident)
            pl.BlockSpec((L, H, G), lambda t: (0, 0, 0)),      # wh_all    (resident)
            pl.BlockSpec((L, 1, G), lambda t: (0, 0, 0)),      # b_all     (resident)
            pl.BlockSpec((H, V), lambda t: (0, 0)),            # w_fc_t    (resident)
            pl.BlockSpec((1, V), lambda t: (0, 0)),            # b_fc      (resident)
        ],
        out_specs=(
            pl.BlockSpec((1, B, V), lambda t: (t, 0, 0)),      # preds: one step each
            pl.BlockSpec((L, B, H), lambda t: (0, 0, 0)),      # hidden_out (last step)
            pl.BlockSpec((L, B, H), lambda t: (0, 0, 0)),      # cell_out   (last step)
        ),
        scratch_shapes=[pltpu.VMEM((L, B, H), jnp.float32),    # h carry
                        pltpu.VMEM((L, B, H), jnp.float32)],   # c carry
    )

    def _nbytes(x):
        return x.size * jnp.dtype(x.dtype).itemsize

    flops = T * (2 * B * V * G + 2 * B * H * G * (2 * L - 1) + 2 * B * H * V)
    transcendentals = T * 5 * B * H * L
    bytes_accessed = (sum(_nbytes(params[k]) for k in
                          ("emb_fold", "wx_all", "wh_all", "b_all", "w_fc_t", "b_fc"))
                      + _nbytes(tok) + T * B * V * 4 + 4 * L * B * H * 4)

    preds, new_h, new_c = pl.pallas_call(
        make_decoder_kernel(L),
        grid_spec=grid_spec,
        out_shape=(jax.ShapeDtypeStruct((T, B, V), jnp.float32),
                   jax.ShapeDtypeStruct((L, B, H), jnp.float32),
                   jax.ShapeDtypeStruct((L, B, H), jnp.float32)),
        # Carry hidden/cell state in place (XLA copies if the caller did not donate).
        input_output_aliases={1: 1, 2: 2},
        compiler_params=pltpu.CompilerParams(dimension_semantics=("arbitrary",)),
        cost_estimate=pl.CostEstimate(flops=flops, transcendentals=transcendentals,
                                      bytes_accessed=bytes_accessed),
    )(*args)
    return preds, new_h, new_c


def decoder_forward(params, inputx, hidden, cell):
    """Matches Decoder.forward: inputx [B] int32, hidden/cell [L, B, H]
    -> pred [B, V], hidden, cell.  (Single-step == T=1 case of the seq kernel.)"""
    preds, new_h, new_c = decoder_forward_seq(params, inputx[None, :], hidden, cell)
    return preds[0], new_h, new_c


def decoder_reference(params, inputx, hidden, cell):
    """Pure-JAX f32 reference mirroring the PyTorch module (eval mode)."""
    H = hidden.shape[-1]
    x = jnp.take(params["_embedding"], inputx, axis=0)
    new_h, new_c = [], []
    for l, lp in enumerate(params["_layers"]):
        gates = x @ lp["w_ih"].T + hidden[l] @ lp["w_hh"].T + lp["b"]
        i = jax.nn.sigmoid(gates[:, 0 * H:1 * H])
        f = jax.nn.sigmoid(gates[:, 1 * H:2 * H])
        g = jnp.tanh(gates[:, 2 * H:3 * H])
        o = jax.nn.sigmoid(gates[:, 3 * H:4 * H])
        c = f * cell[l] + i * g
        h = o * jnp.tanh(c)
        new_h.append(h)
        new_c.append(c)
        x = h
    pred = x @ params["_w_fc"].T + params["_b_fc"]
    return pred, jnp.stack(new_h), jnp.stack(new_c)


if __name__ == "__main__":
    OUTPUT_DIM = 64     # target vocab size
    EMB_DIM = 32
    HID_DIM = 32
    N_LAYERS = 2
    BATCH = 8
    T_STEPS = 5

    key = jax.random.PRNGKey(0)
    k_param, k_tok, k_h, k_c = jax.random.split(key, 4)

    params = init_decoder_params(k_param, OUTPUT_DIM, EMB_DIM, HID_DIM, N_LAYERS)

    tokens = jax.random.randint(k_tok, (T_STEPS, BATCH), 0, OUTPUT_DIM, jnp.int32)
    hidden = jax.random.normal(k_h, (N_LAYERS, BATCH, HID_DIM), jnp.float32)
    cell = jax.random.normal(k_c, (N_LAYERS, BATCH, HID_DIM), jnp.float32)

    # ---- single step (matches Decoder.forward) -----------------------------------
    fwd = jax.jit(decoder_forward)
    pred, new_h, new_c = fwd(params, tokens[0], hidden, cell)
    jax.block_until_ready((pred, new_h, new_c))
    assert pred.shape == (BATCH, OUTPUT_DIM)
    assert new_h.shape == (N_LAYERS, BATCH, HID_DIM)
    assert new_c.shape == (N_LAYERS, BATCH, HID_DIM)

    pred_r, h_r, c_r = decoder_reference(params, tokens[0], hidden, cell)
    # bf16 MXU operands (f32 accumulation) -> ~1e-3 relative error vs the f32 reference.
    assert jnp.allclose(pred, pred_r, atol=2e-2, rtol=2e-2)
    assert jnp.allclose(new_h, h_r, atol=2e-2, rtol=2e-2)
    assert jnp.allclose(new_c, c_r, atol=2e-2, rtol=2e-2)

    # ---- multi-step decode: all T steps in one pallas_call, weights VMEM-resident --
    fwd_seq = jax.jit(decoder_forward_seq)
    preds, h_T, c_T = fwd_seq(params, tokens, hidden, cell)
    jax.block_until_ready((preds, h_T, c_T))

    h_ref, c_ref = hidden, cell
    preds_ref = []
    for t in range(T_STEPS):
        p, h_ref, c_ref = decoder_reference(params, tokens[t], h_ref, c_ref)
        preds_ref.append(p)
    preds_ref = jnp.stack(preds_ref)
    assert jnp.allclose(preds, preds_ref, atol=2e-2, rtol=2e-2)
    assert jnp.allclose(h_T, h_ref, atol=2e-2, rtol=2e-2)
    assert jnp.allclose(c_T, c_ref, atol=2e-2, rtol=2e-2)

    print("KERNEL_OK")
</pallas_src>

<mosaic_0001>
module attributes {stable_mosaic.version = 11 : i64} {
  func.func @kernel(%arg0: i32, %arg1: memref<1x8x1xi32, #tpu.memory_space<vmem>>, %arg2: memref<2x8x32xf32, #tpu.memory_space<vmem>>, %arg3: memref<2x8x32xf32, #tpu.memory_space<vmem>>, %arg4: memref<64x128xbf16, #tpu.memory_space<vmem>>, %arg5: memref<1x32x128xbf16, #tpu.memory_space<vmem>>, %arg6: memref<2x32x128xbf16, #tpu.memory_space<vmem>>, %arg7: memref<2x1x128xf32, #tpu.memory_space<vmem>>, %arg8: memref<32x64xbf16, #tpu.memory_space<vmem>>, %arg9: memref<1x64xf32, #tpu.memory_space<vmem>>, %arg10: memref<1x8x64xf32, #tpu.memory_space<vmem>>, %arg11: memref<2x8x32xf32, #tpu.memory_space<vmem>>, %arg12: memref<2x8x32xf32, #tpu.memory_space<vmem>>, %arg13: memref<2x8x32xf32, #tpu.memory_space<vmem>>, %arg14: memref<2x8x32xf32, #tpu.memory_space<vmem>>) attributes {dimension_semantics = [#tpu.dimension_semantics<arbitrary>], iteration_bounds = array<i64: 1>, scalar_prefetch = 0 : i64, scratch_operands = 2 : i64, tpu.core_type = #tpu.core_type<tc>, window_params = [{transform_indices = @transform_0, window_bounds = array<i64: 1, 8, 1>}, {pipeline_mode = #tpu.pipeline_mode<synchronous>, transform_indices = @transform_1, window_bounds = array<i64: 2, 8, 32>}, {pipeline_mode = #tpu.pipeline_mode<synchronous>, transform_indices = @transform_2, window_bounds = array<i64: 2, 8, 32>}, {pipeline_mode = #tpu.pipeline_mode<synchronous>, transform_indices = @transform_3, window_bounds = array<i64: 64, 128>}, {pipeline_mode = #tpu.pipeline_mode<synchronous>, transform_indices = @transform_4, window_bounds = array<i64: 1, 32, 128>}, {pipeline_mode = #tpu.pipeline_mode<synchronous>, transform_indices = @transform_5, window_bounds = array<i64: 2, 32, 128>}, {pipeline_mode = #tpu.pipeline_mode<synchronous>, transform_indices = @transform_6, window_bounds = array<i64: 2, 1, 128>}, {pipeline_mode = #tpu.pipeline_mode<synchronous>, transform_indices = @transform_7, window_bounds = array<i64: 32, 64>}, {pipeline_mode = #tpu.pipeline_mode<synchronous>, transform_indices = @transform_8, window_bounds = array<i64: 1, 64>}, {transform_indices = @transform_9, window_bounds = array<i64: 1, 8, 64>}, {pipeline_mode = #tpu.pipeline_mode<synchronous>, transform_indices = @transform_10, window_bounds = array<i64: 2, 8, 32>}, {pipeline_mode = #tpu.pipeline_mode<synchronous>, transform_indices = @transform_11, window_bounds = array<i64: 2, 8, 32>}]} {
    %c0_i32 = arith.constant 0 : i32
    %0 = arith.cmpi eq, %arg0, %c0_i32 : i32
    %1 = arith.extui %0 : i1 to i32
    %c0_i32_0 = arith.constant 0 : i32
    %2 = arith.cmpi ne, %1, %c0_i32_0 : i32
    scf.if %2 {
      %c0_62 = arith.constant 0 : index
      %c0_63 = arith.constant 0 : index
      %c0_64 = arith.constant 0 : index
      %117 = vector.load %arg2[%c0_62, %c0_63, %c0_64] : memref<2x8x32xf32, #tpu.memory_space<vmem>>, vector<2x8x32xf32>
      %c0_65 = arith.constant 0 : index
      %c0_66 = arith.constant 0 : index
      %c0_67 = arith.constant 0 : index
      %118 = vector.load %arg13[%c0_65, %c0_66, %c0_67] : memref<2x8x32xf32, #tpu.memory_space<vmem>>, vector<2x8x32xf32>
      tpu.vector_store %arg13[%c0_65, %c0_66, %c0_67], %117 {strides = array<i32>} : memref<2x8x32xf32, #tpu.memory_space<vmem>>, vector<2x8x32xf32>,
      %c0_68 = arith.constant 0 : index
      %c0_69 = arith.constant 0 : index
      %c0_70 = arith.constant 0 : index
      %119 = vector.load %arg3[%c0_68, %c0_69, %c0_70] : memref<2x8x32xf32, #tpu.memory_space<vmem>>, vector<2x8x32xf32>
      %c0_71 = arith.constant 0 : index
      %c0_72 = arith.constant 0 : index
      %c0_73 = arith.constant 0 : index
      %120 = vector.load %arg14[%c0_71, %c0_72, %c0_73] : memref<2x8x32xf32, #tpu.memory_space<vmem>>, vector<2x8x32xf32>
      tpu.vector_store %arg14[%c0_71, %c0_72, %c0_73], %119 {strides = array<i32>} : memref<2x8x32xf32, #tpu.memory_space<vmem>>, vector<2x8x32xf32>,
    } else {
    }
    %c0 = arith.constant 0 : index
    %c0_1 = arith.constant 0 : index
    %c0_2 = arith.constant 0 : index
    %3 = vector.load %arg1[%c0, %c0_1, %c0_2] : memref<1x8x1xi32, #tpu.memory_space<vmem>>, vector<1x8x1xi32>
    %4 = vector.shape_cast %3 : vector<1x8x1xi32> to vector<8x1xi32>
    %5 = tpu.iota {dimensions = array<i32: 1>} : vector<8x64xi32>
    %6 = vector.broadcast %4 : vector<8x1xi32> to vector<8x64xi32>
    %7 = arith.cmpi eq, %5, %6 : vector<8x64xi32>
    %8 = arith.extui %7 : vector<8x64xi1> to vector<8x64xi32>
    %9 = arith.sitofp %8 : vector<8x64xi32> to vector<8x64xf32>
    %10 = arith.truncf %9 : vector<8x64xf32> to vector<8x64xbf16>
    %c0_3 = arith.constant 0 : index
    %c0_4 = arith.constant 0 : index
    %c0_5 = arith.constant 0 : index
    %11 = vector.load %arg13[%c0_3, %c0_4, %c0_5] : memref<2x8x32xf32, #tpu.memory_space<vmem>>, vector<1x8x32xf32>
    %12 = vector.shape_cast %11 : vector<1x8x32xf32> to vector<8x32xf32>
    %c0_6 = arith.constant 0 : index
    %c0_7 = arith.constant 0 : index
    %c0_8 = arith.constant 0 : index
    %13 = vector.load %arg14[%c0_6, %c0_7, %c0_8] : memref<2x8x32xf32, #tpu.memory_space<vmem>>, vector<1x8x32xf32>
    %14 = vector.shape_cast %13 : vector<1x8x32xf32> to vector<8x32xf32>
    %c0_9 = arith.constant 0 : index
    %c0_10 = arith.constant 0 : index
    %15 = vector.load %arg4[%c0_9, %c0_10] : memref<64x128xbf16, #tpu.memory_space<vmem>>, vector<64x128xbf16>
    %cst = arith.constant dense<0.000000e+00> : vector<8x128xf32>
    %16 = tpu.matmul %10, %15, %cst {dimension_numbers = #tpu.dot_dimension_numbers<[1], [0], [0], [1], [0, 0, 1, 1], [], []>} : vector<8x64xbf16>, vector<64x128xbf16>, vector<8x128xf32> -> vector<8x128xf32>
    %17 = arith.truncf %12 : vector<8x32xf32> to vector<8x32xbf16>
    %c0_11 = arith.constant 0 : index
    %c0_12 = arith.constant 0 : index
    %c0_13 = arith.constant 0 : index
    %18 = vector.load %arg6[%c0_11, %c0_12, %c0_13] : memref<2x32x128xbf16, #tpu.memory_space<vmem>>, vector<1x32x128xbf16>
    %19 = vector.shape_cast %18 : vector<1x32x128xbf16> to vector<32x128xbf16>
    %cst_14 = arith.constant dense<0.000000e+00> : vector<8x128xf32>
    %20 = tpu.matmul %17, %19, %cst_14 {dimension_numbers = #tpu.dot_dimension_numbers<[1], [0], [0], [1], [0, 0, 1, 1], [], []>} : vector<8x32xbf16>, vector<32x128xbf16>, vector<8x128xf32> -> vector<8x128xf32>
    %21 = arith.addf %16, %20 : vector<8x128xf32>
    %c0_15 = arith.constant 0 : index
    %c0_16 = arith.constant 0 : index
    %c0_17 = arith.constant 0 : index
    %22 = vector.load %arg7[%c0_15, %c0_16, %c0_17] : memref<2x1x128xf32, #tpu.memory_space<vmem>>, vector<1x1x128xf32>
    %23 = vector.shape_cast %22 : vector<1x1x128xf32> to vector<1x128xf32>
    %24 = vector.broadcast %23 : vector<1x128xf32> to vector<8x128xf32>
    %25 = arith.addf %21, %24 : vector<8x128xf32>
    %26 = vector.extract_strided_slice %25 {offsets = [0, 0], sizes = [8, 32], strides = [1, 1]} : vector<8x128xf32> to vector<8x32xf32>
    %27 = arith.negf %26 : vector<8x32xf32>
    %28 = math.exp %27 : vector<8x32xf32>
    %cst_18 = arith.constant 1.000000e+00 : f32
    %29 = vector.broadcast %cst_18 : f32 to vector<8x32xf32>
    %30 = arith.addf %29, %28 : vector<8x32xf32>
    %31 = arith.divf %29, %30 : vector<8x32xf32>
    %32 = vector.extract_strided_slice %25 {offsets = [0, 32], sizes = [8, 32], strides = [1, 1]} : vector<8x128xf32> to vector<8x32xf32>
    %33 = arith.negf %32 : vector<8x32xf32>
    %34 = math.exp %33 : vector<8x32xf32>
    %cst_19 = arith.constant 1.000000e+00 : f32
    %35 = vector.broadcast %cst_19 : f32 to vector<8x32xf32>
    %36 = arith.addf %35, %34 : vector<8x32xf32>
    %37 = arith.divf %35, %36 : vector<8x32xf32>
    %38 = vector.extract_strided_slice %25 {offsets = [0, 64], sizes = [8, 32], strides = [1, 1]} : vector<8x128xf32> to vector<8x32xf32>
    %39 = math.tanh %38 : vector<8x32xf32>
    %40 = vector.extract_strided_slice %25 {offsets = [0, 96], sizes = [8, 32], strides = [1, 1]} : vector<8x128xf32> to vector<8x32xf32>
    %41 = arith.negf %40 : vector<8x32xf32>
    %42 = math.exp %41 : vector<8x32xf32>
    %cst_20 = arith.constant 1.000000e+00 : f32
    %43 = vector.broadcast %cst_20 : f32 to vector<8x32xf32>
    %44 = arith.addf %43, %42 : vector<8x32xf32>
    %45 = arith.divf %43, %44 : vector<8x32xf32>
    %46 = arith.mulf %37, %14 : vector<8x32xf32>
    %47 = arith.mulf %31, %39 : vector<8x32xf32>
    %48 = arith.addf %46, %47 : vector<8x32xf32>
    %49 = math.tanh %48 : vector<8x32xf32>
    %50 = arith.mulf %45, %49 : vector<8x32xf32>
    %c0_21 = arith.constant 0 : index
    %c0_22 = arith.constant 0 : index
    %c0_23 = arith.constant 0 : index
    %51 = vector.load %arg13[%c0_21, %c0_22, %c0_23] : memref<2x8x32xf32, #tpu.memory_space<vmem>>, vector<1x8x32xf32>
    %52 = vector.shape_cast %51 : vector<1x8x32xf32> to vector<8x32xf32>
    %53 = vector.shape_cast %50 : vector<8x32xf32> to vector<1x8x32xf32>
    tpu.vector_store %arg13[%c0_21, %c0_22, %c0_23], %53 {strides = array<i32>} : memref<2x8x32xf32, #tpu.memory_space<vmem>>, vector<1x8x32xf32>,
    %c0_24 = arith.constant 0 : index
    %c0_25 = arith.constant 0 : index
    %c0_26 = arith.constant 0 : index
    %54 = vector.load %arg14[%c0_24, %c0_25, %c0_26] : memref<2x8x32xf32, #tpu.memory_space<vmem>>, vector<1x8x32xf32>
    %55 = vector.shape_cast %54 : vector<1x8x32xf32> to vector<8x32xf32>
    %56 = vector.shape_cast %48 : vector<8x32xf32> to vector<1x8x32xf32>
    tpu.vector_store %arg14[%c0_24, %c0_25, %c0_26], %56 {strides = array<i32>} : memref<2x8x32xf32, #tpu.memory_space<vmem>>, vector<1x8x32xf32>,
    %c1 = arith.constant 1 : index
    %c0_27 = arith.constant 0 : index
    %c0_28 = arith.constant 0 : index
    %57 = vector.load %arg13[%c1, %c0_27, %c0_28] : memref<2x8x32xf32, #tpu.memory_space<vmem>>, vector<1x8x32xf32>
    %58 = vector.shape_cast %57 : vector<1x8x32xf32> to vector<8x32xf32>
    %c1_29 = arith.constant 1 : index
    %c0_30 = arith.constant 0 : index
    %c0_31 = arith.constant 0 : index
    %59 = vector.load %arg14[%c1_29, %c0_30, %c0_31] : memref<2x8x32xf32, #tpu.memory_space<vmem>>, vector<1x8x32xf32>
    %60 = vector.shape_cast %59 : vector<1x8x32xf32> to vector<8x32xf32>
    %61 = arith.truncf %50 : vector<8x32xf32> to vector<8x32xbf16>
    %c0_32 = arith.constant 0 : index
    %c0_33 = arith.constant 0 : index
    %c0_34 = arith.constant 0 : index
    %62 = vector.load %arg5[%c0_32, %c0_33, %c0_34] : memref<1x32x128xbf16, #tpu.memory_space<vmem>>, vector<1x32x128xbf16>
    %63 = vector.shape_cast %62 : vector<1x32x128xbf16> to vector<32x128xbf16>
    %cst_35 = arith.constant dense<0.000000e+00> : vector<8x128xf32>
    %64 = tpu.matmul %61, %63, %cst_35 {dimension_numbers = #tpu.dot_dimension_numbers<[1], [0], [0], [1], [0, 0, 1, 1], [], []>} : vector<8x32xbf16>, vector<32x128xbf16>, vector<8x128xf32> -> vector<8x128xf32>
    %65 = arith.truncf %58 : vector<8x32xf32> to vector<8x32xbf16>
    %c1_36 = arith.constant 1 : index
    %c0_37 = arith.constant 0 : index
    %c0_38 = arith.constant 0 : index
    %66 = vector.load %arg6[%c1_36, %c0_37, %c0_38] : memref<2x32x128xbf16, #tpu.memory_space<vmem>>, vector<1x32x128xbf16>
    %67 = vector.shape_cast %66 : vector<1x32x128xbf16> to vector<32x128xbf16>
    %cst_39 = arith.constant dense<0.000000e+00> : vector<8x128xf32>
    %68 = tpu.matmul %65, %67, %cst_39 {dimension_numbers = #tpu.dot_dimension_numbers<[1], [0], [0], [1], [0, 0, 1, 1], [], []>} : vector<8x32xbf16>, vector<32x128xbf16>, vector<8x128xf32> -> vector<8x128xf32>
    %69 = arith.addf %64, %68 : vector<8x128xf32>
    %c1_40 = arith.constant 1 : index
    %c0_41 = arith.constant 0 : index
    %c0_42 = arith.constant 0 : index
    %70 = vector.load %arg7[%c1_40, %c0_41, %c0_42] : memref<2x1x128xf32, #tpu.memory_space<vmem>>, vector<1x1x128xf32>
    %71 = vector.shape_cast %70 : vector<1x1x128xf32> to vector<1x128xf32>
    %72 = vector.broadcast %71 : vector<1x128xf32> to vector<8x128xf32>
    %73 = arith.addf %69, %72 : vector<8x128xf32>
    %74 = vector.extract_strided_slice %73 {offsets = [0, 0], sizes = [8, 32], strides = [1, 1]} : vector<8x128xf32> to vector<8x32xf32>
    %75 = arith.negf %74 : vector<8x32xf32>
    %76 = math.exp %75 : vector<8x32xf32>
    %cst_43 = arith.constant 1.000000e+00 : f32
    %77 = vector.broadcast %cst_43 : f32 to vector<8x32xf32>
    %78 = arith.addf %77, %76 : vector<8x32xf32>
    %79 = arith.divf %77, %78 : vector<8x32xf32>
    %80 = vector.extract_strided_slice %73 {offsets = [0, 32], sizes = [8, 32], strides = [1, 1]} : vector<8x128xf32> to vector<8x32xf32>
    %81 = arith.negf %80 : vector<8x32xf32>
    %82 = math.exp %81 : vector<8x32xf32>
    %cst_44 = arith.constant 1.000000e+00 : f32
    %83 = vector.broadcast %cst_44 : f32 to vector<8x32xf32>
    %84 = arith.addf %83, %82 : vector<8x32xf32>
    %85 = arith.divf %83, %84 : vector<8x32xf32>
    %86 = vector.extract_strided_slice %73 {offsets = [0, 64], sizes = [8, 32], strides = [1, 1]} : vector<8x128xf32> to vector<8x32xf32>
    %87 = math.tanh %86 : vector<8x32xf32>
    %88 = vector.extract_strided_slice %73 {offsets = [0, 96], sizes = [8, 32], strides = [1, 1]} : vector<8x128xf32> to vector<8x32xf32>
    %89 = arith.negf %88 : vector<8x32xf32>
    %90 = math.exp %89 : vector<8x32xf32>
    %cst_45 = arith.constant 1.000000e+00 : f32
    %91 = vector.broadcast %cst_45 : f32 to vector<8x32xf32>
    %92 = arith.addf %91, %90 : vector<8x32xf32>
    %93 = arith.divf %91, %92 : vector<8x32xf32>
    %94 = arith.mulf %85, %60 : vector<8x32xf32>
    %95 = arith.mulf %79, %87 : vector<8x32xf32>
    %96 = arith.addf %94, %95 : vector<8x32xf32>
    %97 = math.tanh %96 : vector<8x32xf32>
    %98 = arith.mulf %93, %97 : vector<8x32xf32>
    %c1_46 = arith.constant 1 : index
    %c0_47 = arith.constant 0 : index
    %c0_48 = arith.constant 0 : index
    %99 = vector.load %arg13[%c1_46, %c0_47, %c0_48] : memref<2x8x32xf32, #tpu.memory_space<vmem>>, vector<1x8x32xf32>
    %100 = vector.shape_cast %99 : vector<1x8x32xf32> to vector<8x32xf32>
    %101 = vector.shape_cast %98 : vector<8x32xf32> to vector<1x8x32xf32>
    tpu.vector_store %arg13[%c1_46, %c0_47, %c0_48], %101 {strides = array<i32>} : memref<2x8x32xf32, #tpu.memory_space<vmem>>, vector<1x8x32xf32>,
    %c1_49 = arith.constant 1 : index
    %c0_50 = arith.constant 0 : index
    %c0_51 = arith.constant 0 : index
    %102 = vector.load %arg14[%c1_49, %c0_50, %c0_51] : memref<2x8x32xf32, #tpu.memory_space<vmem>>, vector<1x8x32xf32>
    %103 = vector.shape_cast %102 : vector<1x8x32xf32> to vector<8x32xf32>
    %104 = vector.shape_cast %96 : vector<8x32xf32> to vector<1x8x32xf32>
    tpu.vector_store %arg14[%c1_49, %c0_50, %c0_51], %104 {strides = array<i32>} : memref<2x8x32xf32, #tpu.memory_space<vmem>>, vector<1x8x32xf32>,
    %105 = arith.truncf %98 : vector<8x32xf32> to vector<8x32xbf16>
    %c0_52 = arith.constant 0 : index
    %c0_53 = arith.constant 0 : index
    %106 = vector.load %arg8[%c0_52, %c0_53] : memref<32x64xbf16, #tpu.memory_space<vmem>>, vector<32x64xbf16>
    %cst_54 = arith.constant dense<0.000000e+00> : vector<8x64xf32>
    %107 = tpu.matmul %105, %106, %cst_54 {dimension_numbers = #tpu.dot_dimension_numbers<[1], [0], [0], [1], [0, 0, 1, 1], [], []>} : vector<8x32xbf16>, vector<32x64xbf16>, vector<8x64xf32> -> vector<8x64xf32>
    %c0_55 = arith.constant 0 : index
    %c0_56 = arith.constant 0 : index
    %108 = vector.load %arg9[%c0_55, %c0_56] : memref<1x64xf32, #tpu.memory_space<vmem>>, vector<1x64xf32>
    %109 = vector.broadcast %108 : vector<1x64xf32> to vector<8x64xf32>
    %110 = arith.addf %107, %109 : vector<8x64xf32>
    %c0_57 = arith.constant 0 : index
    %c0_58 = arith.constant 0 : index
    %c0_59 = arith.constant 0 : index
    %111 = vector.load %arg10[%c0_57, %c0_58, %c0_59] : memref<1x8x64xf32, #tpu.memory_space<vmem>>, vector<1x8x64xf32>
    %112 = vector.shape_cast %111 : vector<1x8x64xf32> to vector<8x64xf32>
    %113 = vector.shape_cast %110 : vector<8x64xf32> to vector<1x8x64xf32>
    tpu.vector_store %arg10[%c0_57, %c0_58, %c0_59], %113 {strides = array<i32>} : memref<1x8x64xf32, #tpu.memory_space<vmem>>, vector<1x8x64xf32>,
    %c0_i32_60 = arith.constant 0 : i32
    %114 = arith.cmpi eq, %arg0, %c0_i32_60 : i32
    %115 = arith.extui %114 : i1 to i32
    %c0_i32_61 = arith.constant 0 : i32
    %116 = arith.cmpi ne, %115, %c0_i32_61 : i32
    scf.if %116 {
      %c0_62 = arith.constant 0 : index
      %c0_63 = arith.constant 0 : index
      %c0_64 = arith.constant 0 : index
      %117 = vector.load %arg13[%c0_62, %c0_63, %c0_64] : memref<2x8x32xf32, #tpu.memory_space<vmem>>, vector<2x8x32xf32>
      %c0_65 = arith.constant 0 : index
      %c0_66 = arith.constant 0 : index
      %c0_67 = arith.constant 0 : index
      %118 = vector.load %arg11[%c0_65, %c0_66, %c0_67] : memref<2x8x32xf32, #tpu.memory_space<vmem>>, vector<2x8x32xf32>
      tpu.vector_store %arg11[%c0_65, %c0_66, %c0_67], %117 {strides = array<i32>} : memref<2x8x32xf32, #tpu.memory_space<vmem>>, vector<2x8x32xf32>,
      %c0_68 = arith.constant 0 : index
      %c0_69 = arith.constant 0 : index
      %c0_70 = arith.constant 0 : index
      %119 = vector.load %arg14[%c0_68, %c0_69, %c0_70] : memref<2x8x32xf32, #tpu.memory_space<vmem>>, vector<2x8x32xf32>
      %c0_71 = arith.constant 0 : index
      %c0_72 = arith.constant 0 : index
      %c0_73 = arith.constant 0 : index
      %120 = vector.load %arg12[%c0_71, %c0_72, %c0_73] : memref<2x8x32xf32, #tpu.memory_space<vmem>>, vector<2x8x32xf32>
      tpu.vector_store %arg12[%c0_71, %c0_72, %c0_73], %119 {strides = array<i32>} : memref<2x8x32xf32, #tpu.memory_space<vmem>>, vector<2x8x32xf32>,
    } else {
    }
    return
  }
  func.func @transform_0(%arg0: i32) -> (i32, i32, i32) {
    %c0_i32 = arith.constant 0 : i32
    %c0_i32_0 = arith.constant 0 : i32
    %c0_i32_1 = arith.constant 0 : i32
    return %arg0, %c0_i32, %c0_i32_0 : i32, i32, i32
  }
  func.func @transform_1(%arg0: i32) -> (i32, i32, i32) {
    %c0_i32 = arith.constant 0 : i32
    %c0_i32_0 = arith.constant 0 : i32
    %c0_i32_1 = arith.constant 0 : i32
    %c0_i32_2 = arith.constant 0 : i32
    return %c0_i32, %c0_i32_0, %c0_i32_1 : i32, i32, i32
  }
  func.func @transform_2(%arg0: i32) -> (i32, i32, i32) {
    %c0_i32 = arith.constant 0 : i32
    %c0_i32_0 = arith.constant 0 : i32
    %c0_i32_1 = arith.constant 0 : i32
    %c0_i32_2 = arith.constant 0 : i32
    return %c0_i32, %c0_i32_0, %c0_i32_1 : i32, i32, i32
  }
  func.func @transform_3(%arg0: i32) -> (i32, i32) {
    %c0_i32 = arith.constant 0 : i32
    %c0_i32_0 = arith.constant 0 : i32
    %c0_i32_1 = arith.constant 0 : i32
    return %c0_i32, %c0_i32_0 : i32, i32
  }
  func.func @transform_4(%arg0: i32) -> (i32, i32, i32) {
    %c0_i32 = arith.constant 0 : i32
    %c0_i32_0 = arith.constant 0 : i32
    %c0_i32_1 = arith.constant 0 : i32
    %c0_i32_2 = arith.constant 0 : i32
    return %c0_i32, %c0_i32_0, %c0_i32_1 : i32, i32, i32
  }
  func.func @transform_5(%arg0: i32) -> (i32, i32, i32) {
    %c0_i32 = arith.constant 0 : i32
    %c0_i32_0 = arith.constant 0 : i32
    %c0_i32_1 = arith.constant 0 : i32
    %c0_i32_2 = arith.constant 0 : i32
    return %c0_i32, %c0_i32_0, %c0_i32_1 : i32, i32, i32
  }
  func.func @transform_6(%arg0: i32) -> (i32, i32, i32) {
    %c0_i32 = arith.constant 0 : i32
    %c0_i32_0 = arith.constant 0 : i32
    %c0_i32_1 = arith.constant 0 : i32
    %c0_i32_2 = arith.constant 0 : i32
    return %c0_i32, %c0_i32_0, %c0_i32_1 : i32, i32, i32
  }
  func.func @transform_7(%arg0: i32) -> (i32, i32) {
    %c0_i32 = arith.constant 0 : i32
    %c0_i32_0 = arith.constant 0 : i32
    %c0_i32_1 = arith.constant 0 : i32
    return %c0_i32, %c0_i32_0 : i32, i32
  }
  func.func @transform_8(%arg0: i32) -> (i32, i32) {
    %c0_i32 = arith.constant 0 : i32
    %c0_i32_0 = arith.constant 0 : i32
    %c0_i32_1 = arith.constant 0 : i32
    return %c0_i32, %c0_i32_0 : i32, i32
  }
  func.func @transform_9(%arg0: i32) -> (i32, i32, i32) {
    %c0_i32 = arith.constant 0 : i32
    %c0_i32_0 = arith.constant 0 : i32
    %c0_i32_1 = arith.constant 0 : i32
    return %arg0, %c0_i32, %c0_i32_0 : i32, i32, i32
  }
  func.func @transform_10(%arg0: i32) -> (i32, i32, i32) {
    %c0_i32 = arith.constant 0 : i32
    %c0_i32_0 = arith.constant 0 : i32
    %c0_i32_1 = arith.constant 0 : i32
    %c0_i32_2 = arith.constant 0 : i32
    return %c0_i32, %c0_i32_0, %c0_i32_1 : i32, i32, i32
  }
  func.func @transform_11(%arg0: i32) -> (i32, i32, i32) {
    %c0_i32 = arith.constant 0 : i32
    %c0_i32_0 = arith.constant 0 : i32
    %c0_i32_1 = arith.constant 0 : i32
    %c0_i32_2 = arith.constant 0 : i32
    return %c0_i32, %c0_i32_0, %c0_i32_1 : i32, i32, i32
  }
}

</mosaic_0001>

<bundles_post_ra>
// kernel: decoder_forward.1
= control target key start
LH: loop header
LB: loop body
LE: loop exit
PB: predicated region body
PF: predicated region fallthrough
CT: control target
= control target key end

     0   :  { %17 = vsyncpa [#allocation5], 0  ;;  %s938_s0 = inlined_call_operand.vmem [shape: s32[1,8,1], index: 0, kind: input, shape index: {}]   ;;  %s939_s1 = inlined_call_operand.vmem [shape: f32[2,8,32], index: 1, kind: input, shape index: {}, may-alias: {1,10}]   ;;  %s940_s2 = inlined_call_operand.vmem [shape: f32[2,8,32], index: 2, kind: input, shape index: {}, may-alias: {2,11}]   ;;  %s941_s3 = inlined_call_operand.vmem [shape: bf16[64,128], index: 3, kind: input, shape index: {}]   ;;  %s942_s4 = inlined_call_operand.vmem [shape: bf16[1,32,128], index: 4, kind: input, shape index: {}]   ;;  %s943_s5 = inlined_call_operand.hbm [shape: bf16[2,32,128], index: 5, kind: input, shape index: {}]   ;;  %s944_s6 = inlined_call_operand.vmem [shape: f32[2,1,128], index: 6, kind: input, shape index: {}]   ;;  %s945_s7 = inlined_call_operand.hbm [shape: bf16[32,64], index: 7, kind: input, shape index: {}]   ;;  %s946_s8 = inlined_call_operand.vmem [shape: f32[1,64], index: 8, kind: input, shape index: {}]   ;;  %s947_s9 = inlined_call_operand.hbm [shape: f32[1,8,64], index: 9, kind: output, shape index: {0}]   ;;  %s948_s10 = inlined_call_operand.vmem [shape: f32[2,8,32], index: 10, kind: output, shape index: {1}, may-alias: {1,10}]   ;;  %s949_s11 = inlined_call_operand.vmem [shape: f32[2,8,32], index: 11, kind: output, shape index: {2}, may-alias: {2,11}]  }
   0x1   :  { %18 = vsyncpa [#allocation8], 0 }
   0x2   :  { %19 = vsyncpa [#allocation6], 0  ;;  %s744_s17 = smov [#allocation4]  }
   0x3   :  { %s35_s18 = sshll.u32 %s744_s17, 4  ;;  %s36_s18 = int_to_ptr.vmem [resolvable:$true] %s35_s18 }
   0x4   :  { %s686_s19 = scalar_lea.vmem %s36_s18, 512  ;;  %p691_p1 = scmp.lt.s32.totalorder %s36_s18, %s36_s18 }
   0x5   :  { %p687_p0 = scmp.ne.s32.totalorder %s36_s18, %s686_s19  ;;  %p692_p2 = scmp.lt.s32.totalorder %s686_s19, %s686_s19 }
   0x7   :  { %p693_p3 = por %p692_p2, %p691_p1 }
   0x9   :  { %p694_p4 = pnand %p693_p3, %p687_p0 }
   0xb   :  { %697 = shalt.err (!%p694_p4)
}
   0xc   :  { %s745_s20 = smov 64   ;;  %s746_s21 = smov 4  }
   0xd   :  { %41 = dma.hbm_to_vmem [thread:$0]  %s943_s5, 512, %s36_s18, [#allocation5], %s745_s20, %s745_s20, %s746_s21  }
   0xe   :  { %s747_s24 = smov [#allocation7]  }
   0xf   :  { %s49_s25 = sshll.u32 %s747_s24, 4  ;;  %s50_s25 = int_to_ptr.vmem [resolvable:$true] %s49_s25 }
  0x10   :  { %s706_s26 = scalar_lea.vmem %s50_s25, 256  ;;  %p711_p6 = scmp.lt.s32.totalorder %s50_s25, %s50_s25 }
  0x11   :  { %p707_p5 = scmp.ne.s32.totalorder %s50_s25, %s706_s26  ;;  %p712_p7 = scmp.lt.s32.totalorder %s706_s26, %s706_s26 }
  0x13   :  { %p713_p8 = por %p712_p7, %p711_p6 }
  0x15   :  { %p714_p9 = pnand %p713_p8, %p707_p5 }
  0x17   :  { %717 = shalt.err (!%p714_p9)
}
  0x18   :  { %55 = dma.hbm_to_vmem [thread:$0]  %s945_s7, 256, %s50_s25, [#allocation8], %s745_s20, %s745_s20, %s746_s21  }
  0x19   :  { %738 = dma.done.wait [#allocation5], 512  }
  0x1a   :  { %739 = vsyncadd [#allocation5], 4294966784 }
  0x1b   :  { %740 = dma.done.wait [#allocation8], 256  }
  0x1c   :  { %741 = vsyncadd [#allocation8], 4294967040  ;;  %v748_v0 = vmov 0   ;;  %v749_v1 = vmov 0.0   ;;  %vm750_vm0 = vmmov 0   ;;  %v78_v2 = vld [vmem:[%s938_s0] sm:$0xff]  ;;  %v79_v14 = vlaneseq }
  0x1d   :  { %649 = vset.pattern.permute.xlu0 %v748_v0  ;;  %603 = vmatprep.subr.bf16.mxu1 %v749_v1  ;;  %v650_v3 = vld [vmem:[%s941_s3 + $0x18] sm:$0xff]   ;;  %v651_v4 = vld [vmem:[#allocation4 + $0x8] sm:$0xff]   ;;  %v652_v5 = vld [vmem:[%s941_s3 + $0x10] sm:$0xff]   ;;  %vm71_vm1 = vcmask 261120   ;;  %s751_s22 = smov 32   ;;  %vm183_vm3 = vcmask 523264  }
  0x1e   :  { %595 = vmatprep.subr.bf16.mxu0 %v749_v1  ;;  %599 = vmatprep.mubr.msk.bf16.mxu0 %vm750_vm0, %v749_v1  ;;  %v653_v6 = vld [vmem:[#allocation4] sm:$0xff]   ;;  %v654_v8 = vld [vmem:[%s941_s3 + $0x8] sm:$0xff]   ;;  %v80_v15 = vand.u32 127, %v79_v14  ;;  %v656_v41 = vld [vmem:[#allocation4 + $0x18] sm:$0xff]  }
  0x1f   :  { %611 = vmatprep.mubr.msk.bf16.mxu1 %vm750_vm0, %v749_v1  ;;  %82 = vperm.xlu0 %649, %v78_v2   ;;  %v69_v7 = vld [vmem:[%s939_s1] sm:$0xff]  ;;  %v70_v42 = vld [vmem:[%s939_s1 + $0x8] sm:$0xff]  ;;  %v657_v43 = vld [vmem:[#allocation4 + $0x10] sm:$0xff]  }
  0x20   :  { %604 = vmatpush3.bf16.msra.mxu1 %v650_v3  ;;  %596 = vmatpush3.bf16.msra.mxu0 %v651_v4  ;;  %72 = vst.msk [vmem:[#allocation2] sm:$0xff] %vm71_vm1, %v69_v7  ;;  %v74_v9 = vld [vmem:[%s940_s2] sm:$0xff]  ;;  %73 = vst.msk [vmem:[#allocation2 + $0x8] sm:$0xff] %vm71_vm1, %v70_v42  ;;  %v658_v46 = vld [vmem:[%s942_s4 + $0x8] sm:$0xff]  }
  0x21   :  { %605 = vmatprep.subr.bf16.mxu1 %v749_v1  ;;  %597 = vmatprep.subr.bf16.mxu0 %v749_v1  ;;  %76 = vst.msk [vmem:[#allocation3] sm:$0xff] %vm71_vm1, %v74_v9  ;;  %v655_v10 = vld [vmem:[%s941_s3] sm:$0xff]   ;;  %v75_v49 = vld [vmem:[%s940_s2 + $0x8] sm:$0xff] }
  0x22   :  { %v563_v24 = vld [vmem:[%s944_s6] ss:$0 sm:$0xff]  ;;  %77 = vst.msk [vmem:[#allocation3 + $0x8] sm:$0xff] %vm71_vm1, %v75_v49  ;;  %v572_v60 = vld [vmem:[%s944_s6 + $0x1] ss:$0 sm:$0xff]  ;;  %s752_s6 = smov 96  }
  0x23   :  { %v659_v48 = vld [vmem:[%s942_s4] sm:$0xff]  }
  0x24   :  { %606 = vmatpush3.bf16.msra.mxu1 %v652_v5  ;;  %598 = vmatpush3.bf16.msra.mxu0 %v653_v6 }
  0x25   :  { %607 = vmatprep.subr.bf16.mxu1 %v749_v1  ;;  %615 = vmatprep.subr.bf16.mxu0 %v749_v1 }
  0x27   :  { %v88_v11 = vld [vmem:[#allocation2] sm:$0xff]  ;;  %v274_v45 = vld [vmem:[#allocation2 + $0x8] sm:$0xff] }
  0x28   :  { %608 = vmatpush3.bf16.msra.mxu1 %v654_v8  ;;  %v98_v12 = vpack.c.bf16 %v88_v11, %v88_v11  ;;  %v89_v13 = vld [vmem:[#allocation3] sm:$0xff]  ;;  %v282_v47 = vpack.c.bf16 %v274_v45, %v274_v45 }
  0x29   :  { %609 = vmatprep.subr.bf16.mxu1 %v749_v1  ;;  %243 = vrot.lane.b32.xlu1 %v89_v13, %s751_s22  ;;  %v276_v53 = vld [vmem:[#allocation3 + $0x8] sm:$0xff] }
  0x2a   :  { %600 = vmatmul.mubr.msk.bf16.vlgmr.msra.gmra.mxu0 %vm71_vm1, %v98_v12 }
  0x2b   :  { %619 = vmatprep.mubr.msk.bf16.mxu0 %vm750_vm0, %v749_v1  ;;  %616 = vmatpush3.bf16.msra.mxu0 %v656_v41 }
  0x2c   :  { %610 = vmatpush3.bf16.msra.mxu1 %v655_v10  ;;  %617 = vmatprep.subr.bf16.mxu0 %v749_v1 }
  0x2d   :  { %631 = vmatprep.subr.bf16.mxu1 %v749_v1 }
  0x2f   :  { %618 = vmatpush3.bf16.msra.mxu0 %v657_v43 }
  0x30   :  { %623 = vmatprep.subr.bf16.mxu0 %v749_v1 }
  0x32   :  { %620 = vmatmul.mubr.msk.bf16.vlgmr.msra.gmra.mxu0 %vm71_vm1, %v282_v47 }
  0x33   :  { %624 = vmatpush3.bf16.msra.mxu0 %v658_v46  ;;  %627 = vmatprep.mubr.msk.bf16.mxu0 %vm750_vm0, %v749_v1 }
  0x34   :  { %625 = vmatprep.subr.bf16.mxu0 %v749_v1 }
  0x37   :  { %626 = vmatpush3.bf16.msra.mxu0 %v659_v48 }
  0x9a   :  { %v83_v16 = vpop.permute.xlu0 %82 }
  0x9b   :  { %vm84_vm2 = vcmp.eq.s32.totalorder %v80_v15, %v83_v16  ;;  %v244_v37 = vpop.permute.xlu1 %243  ;;  %v660_v15 = vld [vmem:[#allocation7 + $0x8] sm:$0xff]   ;;  %v661_v16 = vld [vmem:[#allocation7] sm:$0xff]  }
  0x9c   :  { %v554_v17 = vsel %vm84_vm2, 1.0, %v749_v1 }
  0x9d   :  { %v87_v18 = vpack.c.bf16 %v554_v17, %v554_v17 }
  0x9f   :  { %612 = vmatmul.mubr.msk.bf16.vlgmr.msra.gmra.mxu1 %vm183_vm3, %v87_v18 }
  0xa0   :  { %635 = vmatprep.mubr.msk.bf16.mxu1 %vm750_vm0, %v749_v1  ;;  %632 = vmatpush3.bf16.msra.mxu1 %v660_v15 }
  0xa1   :  { %633 = vmatprep.subr.bf16.mxu1 %v749_v1 }
  0xa4   :  { %634 = vmatpush3.bf16.msra.mxu1 %v661_v16 }
  0xea   :  { %v153_v19 = vpop.f32.mrf.mxu0 }
  0xec   :  { %v601_v20 = vpop.f32.mrf.mxu0 }
  0xee   :  { %v156_v21 = vpop.f32.mrf.mxu0 }
  0xf0   :  { %v602_v22 = vpop.f32.mrf.mxu0 }
  0xf2   :  { %v337_v54 = vpop.f32.mrf.mxu0 }
  0xf4   :  { %v621_v55 = vpop.f32.mrf.mxu0 }
  0xf6   :  { %v340_v56 = vpop.f32.mrf.mxu0 }
  0xf8   :  { %v622_v57 = vpop.f32.mrf.mxu0 }
 0x15f   :  { %v221_v23 = vpop.f32.mrf.mxu1 }
 0x160   :  { %v222_v25 = vadd.f32 %v221_v23, %v153_v19 }
 0x161   :  { %v613_v26 = vpop.f32.mrf.mxu1 }
 0x162   :  { %v234_v27 = vadd.f32 %v563_v24, %v222_v25 }
 0x163   :  { %v224_v28 = vpop.f32.mrf.mxu1 }
 0x164   :  { %662 = vtanh.f32 %v234_v27  ;;  %v564_v31 = vmul.f32 -1.442695, %v234_v27  ;;  %v574_v28 = vld [vmem:[%s946_s8] ss:$0 sm:$0xff] }
 0x165   :  { %v614_v29 = vpop.f32.mrf.mxu1 }
 0x166   :  { %664 = vpow2.f32 %v564_v31 }
 0x171   :  { %v663_v30 = vpop.eup %662 }
 0x172   :  { %248 = vrot.lane.b32.xlu0 %v663_v30, %s745_s20 }
 0x173   :  { %v665_v32 = vpop.eup %664 }
 0x174   :  { %v238_v33 = vadd.f32 1.0, %v665_v32 }
 0x176   :  { %666 = vrcp.f32 %v238_v33 }
 0x183   :  { %v667_v34 = vpop.eup %666 }
 0x184   :  { %v246_v38 = vmul.f32 %v667_v34, %v244_v37 }
 0x1e4   :  { %v249_v35 = vpop.permute.xlu0 %248 }
 0x1e5   :  { %v251_v36 = vmul.f32 %v667_v34, %v249_v35 }
 0x1e7   :  { %253 = vrot.lane.b32.xlu1 %v251_v36, %s751_s22 }
 0x259   :  { %v254_v39 = vpop.permute.xlu1 %253 }
 0x25a   :  { %v872_v40 = vadd.f32 %v254_v39, %v246_v38 }
 0x25c   :  { %668 = vtanh.f32 %v872_v40 }
 0x269   :  { %v669_v44 = vpop.eup %668 }
 0x26a   :  { %259 = vrot.lane.b32.xlu0 %v669_v44, %s745_s20 }
 0x2dc   :  { %v260_v50 = vpop.permute.xlu0 %259 }
 0x2dd   :  { %v262_v51 = vmul.f32 %v667_v34, %v260_v50 }
 0x2df   :  { %v277_v52 = vpack.c.bf16 %v262_v51, %v262_v51 }
 0x2e1   :  { %344 = vrot.lane.b32.xlu1 %v277_v52, %s751_s22 }
 0x2e5   :  { %418 = vrot.lane.b32.xlu1 %v276_v53, %s751_s22 }
 0x353   :  { %v345_v58 = vpop.permute.xlu1 %344 }
 0x354   :  { %628 = vmatmul.mubr.msk.bf16.vlgmr.msra.gmra.mxu0 %vm71_vm1, %v345_v58 }
 0x357   :  { %v419_v10 = vpop.permute.xlu1 %418 }
 0x414   :  { %v395_v59 = vpop.f32.mrf.mxu0 }
 0x415   :  { %v396_v61 = vadd.f32 %v395_v59, %v337_v54 }
 0x416   :  { %v629_v62 = vpop.f32.mrf.mxu0 }
 0x417   :  { %v409_v63 = vadd.f32 %v572_v60, %v396_v61 }
 0x418   :  { %v398_v0 = vpop.f32.mrf.mxu0 }
 0x419   :  { %670 = vtanh.f32 %v409_v63  ;;  %v573_v4 = vmul.f32 -1.442695, %v409_v63 }
 0x41a   :  { %v630_v2 = vpop.f32.mrf.mxu0 }
 0x41b   :  { %672 = vpow2.f32 %v573_v4 }
 0x426   :  { %v671_v3 = vpop.eup %670 }
 0x427   :  { %423 = vrot.lane.b32.xlu0 %v671_v3, %s745_s20 }
 0x428   :  { %v673_v5 = vpop.eup %672 }
 0x429   :  { %v413_v6 = vadd.f32 1.0, %v673_v5 }
 0x42b   :  { %674 = vrcp.f32 %v413_v6 }
 0x438   :  { %v675_v7 = vpop.eup %674 }
 0x439   :  { %v421_v11 = vmul.f32 %v675_v7, %v419_v10 }
 0x499   :  { %v424_v8 = vpop.permute.xlu0 %423 }
 0x49a   :  { %v426_v9 = vmul.f32 %v675_v7, %v424_v8 }
 0x49c   :  { %428 = vrot.lane.b32.xlu0 %v426_v9, %s751_s22 }
 0x50e   :  { %v429_v12 = vpop.permute.xlu0 %428 }
 0x50f   :  { %v431_v13 = vadd.f32 %v429_v12, %v421_v11 }
 0x511   :  { %676 = vtanh.f32 %v431_v13 }
 0x51e   :  { %v677_v14 = vpop.eup %676 }
 0x51f   :  { %434 = vrot.lane.b32.xlu1 %v677_v14, %s745_s20 }
 0x523   :  { %264 = vrot.lane.b32.xlu1 %v262_v51, %s751_s22 }
 0x591   :  { %v435_v17 = vpop.permute.xlu1 %434 }
 0x592   :  { %v437_v18 = vmul.f32 %v675_v7, %v435_v17 }
 0x594   :  { %v448_v19 = vpack.c.bf16 %v437_v18, %v437_v18  ;;  %439 = vrot.lane.b32.xlu1 %v437_v18, %s751_s22 }
 0x595   :  { %v265_v20 = vpop.permute.xlu1 %264 }
 0x596   :  { %267 = vst.msk [vmem:[#allocation2] sm:$0xff] %vm71_vm1, %v265_v20  ;;  %461 = vrot.lane.b32.xlu0 %v448_v19, %s751_s22 }
 0x59a   :  { %269 = vrot.lane.b32.xlu0 %v872_v40, %s752_s6 }
 0x59d   :  { %v522_v21 = vld [vmem:[#allocation2] sm:$0xff] }
 0x59e   :  { %524 = vst.msk [vmem:[%s948_s10] sm:$0xff] %vm71_vm1, %v522_v21  ;;  %444 = vrot.lane.b32.xlu0 %v431_v13, %s752_s6 }
 0x606   :  { %v440_v1 = vpop.permute.xlu1 %439 }
 0x607   :  { %442 = vst.msk [vmem:[#allocation2 + $0x8] sm:$0xff] %vm71_vm1, %v440_v1 }
 0x608   :  { %v462_v22 = vpop.permute.xlu0 %461 }
 0x609   :  { %636 = vmatmul.mubr.msk.bf16.vlgmr.msra.gmra.mxu1 %vm71_vm1, %v462_v22 }
 0x60c   :  { %v270_v23 = vpop.permute.xlu0 %269 }
 0x60d   :  { %272 = vst.msk [vmem:[#allocation3] sm:$0xff] %vm71_vm1, %v270_v23 }
 0x60e   :  { %v523_v24 = vld [vmem:[#allocation2 + $0x8] sm:$0xff] }
 0x60f   :  { %525 = vst.msk [vmem:[%s948_s10 + $0x8] sm:$0xff] %vm71_vm1, %v523_v24  ;;  %s753_s10 = smov [#allocation9]  }
 0x610   :  { %v445_v25 = vpop.permute.xlu0 %444  ;;  %s536_s18 = sshll.u32 %s753_s10, 4  ;;  %s537_s18 = int_to_ptr.vmem [resolvable:$true] %s536_s18 }
 0x611   :  { %447 = vst.msk [vmem:[#allocation3 + $0x8] sm:$0xff] %vm71_vm1, %v445_v25  ;;  %s718_s19 = scalar_lea.vmem %s537_s18, 128  ;;  %p723_p11 = scmp.lt.s32.totalorder %s537_s18, %s537_s18 }
 0x612   :  { %p719_p10 = scmp.ne.s32.totalorder %s537_s18, %s718_s19  ;;  %p724_p12 = scmp.lt.s32.totalorder %s718_s19, %s718_s19 }
 0x614   :  { %v526_v26 = vld [vmem:[#allocation3] sm:$0xff]  ;;  %p725_p13 = por %p724_p12, %p723_p11 }
 0x615   :  { %528 = vst.msk [vmem:[%s949_s11] sm:$0xff] %vm71_vm1, %v526_v26 }
 0x616   :  { %p726_p0 = pnand %p725_p13, %p719_p10 }
 0x618   :  { %v527_v27 = vld [vmem:[#allocation3 + $0x8] sm:$0xff] }
 0x619   :  { %529 = vst.msk [vmem:[%s949_s11 + $0x8] sm:$0xff] %vm71_vm1, %v527_v27 }
 0x6c9   :  { %v512_v29 = vpop.f32.mrf.mxu1 }
 0x6ca   :  { %v513_v30 = vadd.f32 %v574_v28, %v512_v29 }
 0x6cb   :  { %v637_v31 = vpop.f32.mrf.mxu1 }
 0x6cc   :  { %518 = vst.msk [vmem:[#allocation9] sm:$0xff] %vm183_vm3, %v513_v30 }
 0x6cd   :  { %v515_v32 = vpop.f32.mrf.mxu1 }
 0x6ce   :  { %729 = shalt.err (!%p726_p0)
}
 0x6cf   :  { %539 = dma.vmem_to_hbm [thread:$0]  %s537_s18, 128, %s947_s9, [#allocation6]   ;;  %v638_v33 = vpop.f32.mrf.mxu1 }
 0x6d0   :  { %742 = dma.done.wait [#allocation6], 128  }
 0x6d1   :  { %743 = vsyncadd [#allocation6], 4294967168 }
 0x6d2   :  { %551 = vsyncpa [#allocation5], 1 }
 0x6d3   :  { %552 = vsyncpa [#allocation8], 1 }
 0x6d4   :  { %553 = vsyncpa [#allocation6], 1 }

</bundles_post_ra>
